<compile_context>
chip_gen: v6e
topology: v6e:2x2x1
jax: 0.10.0
libtpu: 0.0.40
codegen_flags: <defaults>
</compile_context>

<pallas_src>
import math

import jax
import jax.numpy as jnp
from jax.experimental import pallas as pl
from jax.experimental.pallas import tpu as pltpu


def _tensorcores_per_chip():
    """Best-effort TensorCores-per-chip (v7x = 2, v5e/v6e = 1)."""
    try:
        kind = jax.devices()[0].device_kind.lower()
    except Exception:
        return 1
    if any(tag in kind for tag in ("v7", "7x", "v5p", "v4")):
        return 2
    return 1


def cls_attention_kernel(w_ref, xc_ref, xt_ref, o_ref):
    w = w_ref[...]                        # (Ncls, F)       bf16
    xc = xc_ref[0]                        # (F, Bp*HW)      bf16, HW on lanes
    bp = o_ref.shape[0]                   # batches handled by this grid step
    hw = xc.shape[1] // bp

    # 1x1 Conv2d over channels for ALL batches of this step in one MXU pass:
    # (Ncls, F) @ (F, Bp*HW) -> (Ncls, Bp*HW), f32 accumulation.
    logits = jnp.dot(w, xc, preferred_element_type=jnp.float32)

    # Short static per-batch loop (Bp is 1 or 2): softmax over this batch's HW
    # chunk (lane axis stays fully occupied) + MXU-native second matmul.
    for b in range(bp):
        lg = logits[:, b * hw:(b + 1) * hw]                    # (Ncls, HW) f32
        m = jnp.max(lg, axis=-1, keepdims=True)
        e = jnp.exp(lg - m)
        inv = pl.reciprocal(jnp.sum(e, axis=-1, keepdims=True), approx=False)
        att = (e * inv).astype(xc.dtype)                       # (Ncls, HW) bf16

        # (Ncls, HW) @ (HW, F) -> (Ncls, F). The (HW, F) operand arrives
        # pre-transposed from the wrapper, so the contraction is lane x sublane
        # (MXU-native) and no in-kernel relayout of the big feats tile is needed.
        xt_b = xt_ref[0, b * hw:(b + 1) * hw, :]               # (HW, F) bf16
        out = jnp.dot(att, xt_b, preferred_element_type=jnp.float32)
        o_ref[b] = out.astype(o_ref.dtype)


def cls_attention(feats, weight, *, compute_dtype=jnp.bfloat16, grid_steps=None):
    """feats: (B, F, HW) f32; weight: (num_classes, F) f32 -> (B, num_classes, F) f32."""
    B, F, HW = feats.shape
    ncls, Fw = weight.shape
    assert Fw == F, (Fw, F)

    if grid_steps is None:
        cores = _tensorcores_per_chip()
        grid_steps = cores if (B % cores == 0) else 1
    G = int(grid_steps)
    assert B % G == 0, (B, G)
    Bp = B // G                                   # batch elements per grid step

    x = feats.astype(compute_dtype)
    w = weight.astype(compute_dtype)

    # Two HBM views of feats (materialised once by XLA, outside the kernel):
    #   x_cat : (G, F, Bp*HW)  -- per step, batches concatenated on the lane (HW)
    #                             axis so the first matmul runs once per step.
    #   x_t   : (G, Bp*HW, F)  -- per step, feats^T so the second matmul is
    #                             MXU-native (no in-kernel transpose of feats).
    x_cat = jnp.transpose(x.reshape(G, Bp, F, HW), (0, 2, 1, 3)).reshape(G, F, Bp * HW)
    x_t = jnp.transpose(x, (0, 2, 1)).reshape(G, Bp * HW, F)

    itemsize = jnp.dtype(compute_dtype).itemsize
    # VMEM residency per grid step (BlockSpec double-buffers each input). ~0.4 MiB
    # at these shapes. If this kernel is reused with much larger HW (e.g. 56*56)
    # or F, re-derive against v7x's 64 MiB physical / 32 MiB default scoped VMEM
    # and set pltpu.CompilerParams(vmem_limit_bytes=...) explicitly.
    step_bytes = (2 * 2 * F * Bp * HW * itemsize      # x_cat + x_t blocks, 2x buffered
                  + ncls * F * itemsize               # resident weight
                  + 2 * Bp * ncls * F * 4)            # f32 output block, 2x buffered
    if step_bytes > 32 * 1024 * 1024:
        raise ValueError(
            f"per-step VMEM residency {step_bytes / 2**20:.1f} MiB exceeds the 32 MiB "
            "default scoped VMEM; shrink the per-step block or raise vmem_limit_bytes.")

    cost = pl.CostEstimate(
        flops=4 * B * ncls * F * HW,                  # two matmuls per batch element
        transcendentals=B * ncls * HW,                # exp
        bytes_accessed=(x_cat.size + x_t.size + w.size) * itemsize + B * ncls * F * 4,
    )

    return pl.pallas_call(
        cls_attention_kernel,
        out_shape=jax.ShapeDtypeStruct((B, ncls, F), jnp.float32),
        grid_spec=pl.GridSpec(
            grid=(G,),
            in_specs=[
                pl.BlockSpec((ncls, F), lambda g: (0, 0)),            # weight (resident)
                pl.BlockSpec((1, F, Bp * HW), lambda g: (g, 0, 0)),   # feats, HW on lanes
                pl.BlockSpec((1, Bp * HW, F), lambda g: (g, 0, 0)),   # feats^T, F on lanes
            ],
            out_specs=pl.BlockSpec((Bp, ncls, F), lambda g: (g, 0, 0)),
        ),
        compiler_params=pltpu.CompilerParams(
            # Single step on 1-TC v5e/v6e (G=1); on v7x the 2-step grid is split
            # across both TensorCores by the "parallel" semantics.
            dimension_semantics=("parallel",),
        ),
        cost_estimate=cost,
    )(w, x_cat, x_t)


def cls_attention_ref(feats, weight):
    """Pure-JAX f32 reference of the PyTorch forward."""
    logits = jnp.einsum('cf,bfn->bcn', weight, feats)
    att = jax.nn.softmax(logits, axis=-1)
    return jnp.einsum('bcn,bfn->bcf', att, feats)


if __name__ == "__main__":
    # feat_size=128, num_classes=16, HW = 16*16 = 256  (lane-dense: F, HW multiples of 128)
    B, F, HW, NCLS = 2, 128, 256, 16

    key = jax.random.PRNGKey(0)
    k_x, k_w = jax.random.split(key)
    feats = jax.random.normal(k_x, (B, F, HW), jnp.float32)
    # PyTorch Conv2d default init (kaiming_uniform, a=sqrt(5)) == U(-1/sqrt(fan_in), +1/sqrt(fan_in))
    bound = 1.0 / math.sqrt(F)
    weight = jax.random.uniform(k_w, (NCLS, F), jnp.float32, -bound, bound)

    out = cls_attention(feats, weight)
    jax.block_until_ready(out)

    ref = cls_attention_ref(feats, weight)
    assert out.shape == (B, NCLS, F) and out.dtype == jnp.float32
    # loose tolerance: kernel runs bf16 operands with f32 accumulation, reference is pure f32
    max_err = float(jnp.max(jnp.abs(out - ref)))
    assert jnp.allclose(out, ref, rtol=5e-2, atol=2e-2), max_err
    print("KERNEL_OK")
</pallas_src>

<mosaic_0001>
module attributes {stable_mosaic.version = 11 : i64} {
  func.func @cls_attention_kernel(%arg0: i32, %arg1: memref<16x128xbf16, #tpu.memory_space<vmem>>, %arg2: memref<1x128x512xbf16, #tpu.memory_space<vmem>>, %arg3: memref<1x512x128xbf16, #tpu.memory_space<vmem>>, %arg4: memref<2x16x128xf32, #tpu.memory_space<vmem>>) attributes {dimension_semantics = [#tpu.dimension_semantics<parallel>], iteration_bounds = array<i64: 1>, scalar_prefetch = 0 : i64, scratch_operands = 0 : i64, tpu.core_type = #tpu.core_type<tc>, window_params = [{pipeline_mode = #tpu.pipeline_mode<synchronous>, transform_indices = @transform_0, window_bounds = array<i64: 16, 128>}, {transform_indices = @transform_1, window_bounds = array<i64: 1, 128, 512>}, {transform_indices = @transform_2, window_bounds = array<i64: 1, 512, 128>}, {transform_indices = @transform_3, window_bounds = array<i64: 2, 16, 128>}]} {
    %c0 = arith.constant 0 : index
    %c0_0 = arith.constant 0 : index
    %0 = vector.load %arg1[%c0, %c0_0] : memref<16x128xbf16, #tpu.memory_space<vmem>>, vector<16x128xbf16>
    %c0_1 = arith.constant 0 : index
    %c0_2 = arith.constant 0 : index
    %c0_3 = arith.constant 0 : index
    %1 = vector.load %arg2[%c0_1, %c0_2, %c0_3] : memref<1x128x512xbf16, #tpu.memory_space<vmem>>, vector<1x128x512xbf16>
    %2 = vector.shape_cast %1 : vector<1x128x512xbf16> to vector<128x512xbf16>
    %cst = arith.constant dense<0.000000e+00> : vector<16x512xf32>
    %3 = tpu.matmul %0, %2, %cst {dimension_numbers = #tpu.dot_dimension_numbers<[1], [0], [0], [1], [0, 0, 1, 1], [], []>} : vector<16x128xbf16>, vector<128x512xbf16>, vector<16x512xf32> -> vector<16x512xf32>
    %4 = vector.extract_strided_slice %3 {offsets = [0, 0], sizes = [16, 256], strides = [1, 1]} : vector<16x512xf32> to vector<16x256xf32>
    %cst_4 = arith.constant dense<0xFF800000> : vector<16xf32>
    %5 = vector.multi_reduction <maximumf>, %4, %cst_4 [1] : vector<16x256xf32> to vector<16xf32>
    %6 = vector.shape_cast %5 : vector<16xf32> to vector<16x1xf32>
    %7 = vector.broadcast %6 : vector<16x1xf32> to vector<16x256xf32>
    %8 = arith.subf %4, %7 : vector<16x256xf32>
    %9 = math.exp %8 : vector<16x256xf32>
    %cst_5 = arith.constant dense<0.000000e+00> : vector<16xf32>
    %10 = vector.multi_reduction <add>, %9, %cst_5 [1] : vector<16x256xf32> to vector<16xf32>
    %11 = vector.shape_cast %10 : vector<16xf32> to vector<16x1xf32>
    %12 = tpu.reciprocal %11 : vector<16x1xf32> -> vector<16x1xf32>
    %13 = vector.broadcast %12 : vector<16x1xf32> to vector<16x256xf32>
    %14 = arith.mulf %9, %13 : vector<16x256xf32>
    %15 = arith.truncf %14 : vector<16x256xf32> to vector<16x256xbf16>
    %c0_6 = arith.constant 0 : index
    %c0_7 = arith.constant 0 : index
    %c0_8 = arith.constant 0 : index
    %16 = vector.load %arg3[%c0_6, %c0_7, %c0_8] : memref<1x512x128xbf16, #tpu.memory_space<vmem>>, vector<1x256x128xbf16>
    %17 = vector.shape_cast %16 : vector<1x256x128xbf16> to vector<256x128xbf16>
    %cst_9 = arith.constant dense<0.000000e+00> : vector<16x128xf32>
    %18 = tpu.matmul %15, %17, %cst_9 {dimension_numbers = #tpu.dot_dimension_numbers<[1], [0], [0], [1], [0, 0, 1, 1], [], []>} : vector<16x256xbf16>, vector<256x128xbf16>, vector<16x128xf32> -> vector<16x128xf32>
    %c0_10 = arith.constant 0 : index
    %c0_11 = arith.constant 0 : index
    %c0_12 = arith.constant 0 : index
    %19 = vector.load %arg4[%c0_10, %c0_11, %c0_12] : memref<2x16x128xf32, #tpu.memory_space<vmem>>, vector<1x16x128xf32>
    %20 = vector.shape_cast %19 : vector<1x16x128xf32> to vector<16x128xf32>
    %21 = vector.shape_cast %18 : vector<16x128xf32> to vector<1x16x128xf32>
    tpu.vector_store %arg4[%c0_10, %c0_11, %c0_12], %21 {strides = array<i32>} : memref<2x16x128xf32, #tpu.memory_space<vmem>>, vector<1x16x128xf32>,
    %22 = vector.extract_strided_slice %3 {offsets = [0, 256], sizes = [16, 256], strides = [1, 1]} : vector<16x512xf32> to vector<16x256xf32>
    %cst_13 = arith.constant dense<0xFF800000> : vector<16xf32>
    %23 = vector.multi_reduction <maximumf>, %22, %cst_13 [1] : vector<16x256xf32> to vector<16xf32>
    %24 = vector.shape_cast %23 : vector<16xf32> to vector<16x1xf32>
    %25 = vector.broadcast %24 : vector<16x1xf32> to vector<16x256xf32>
    %26 = arith.subf %22, %25 : vector<16x256xf32>
    %27 = math.exp %26 : vector<16x256xf32>
    %cst_14 = arith.constant dense<0.000000e+00> : vector<16xf32>
    %28 = vector.multi_reduction <add>, %27, %cst_14 [1] : vector<16x256xf32> to vector<16xf32>
    %29 = vector.shape_cast %28 : vector<16xf32> to vector<16x1xf32>
    %30 = tpu.reciprocal %29 : vector<16x1xf32> -> vector<16x1xf32>
    %31 = vector.broadcast %30 : vector<16x1xf32> to vector<16x256xf32>
    %32 = arith.mulf %27, %31 : vector<16x256xf32>
    %33 = arith.truncf %32 : vector<16x256xf32> to vector<16x256xbf16>
    %c0_15 = arith.constant 0 : index
    %c256 = arith.constant 256 : index
    %c0_16 = arith.constant 0 : index
    %34 = vector.load %arg3[%c0_15, %c256, %c0_16] : memref<1x512x128xbf16, #tpu.memory_space<vmem>>, vector<1x256x128xbf16>
    %35 = vector.shape_cast %34 : vector<1x256x128xbf16> to vector<256x128xbf16>
    %cst_17 = arith.constant dense<0.000000e+00> : vector<16x128xf32>
    %36 = tpu.matmul %33, %35, %cst_17 {dimension_numbers = #tpu.dot_dimension_numbers<[1], [0], [0], [1], [0, 0, 1, 1], [], []>} : vector<16x256xbf16>, vector<256x128xbf16>, vector<16x128xf32> -> vector<16x128xf32>
    %c1 = arith.constant 1 : index
    %c0_18 = arith.constant 0 : index
    %c0_19 = arith.constant 0 : index
    %37 = vector.load %arg4[%c1, %c0_18, %c0_19] : memref<2x16x128xf32, #tpu.memory_space<vmem>>, vector<1x16x128xf32>
    %38 = vector.shape_cast %37 : vector<1x16x128xf32> to vector<16x128xf32>
    %39 = vector.shape_cast %36 : vector<16x128xf32> to vector<1x16x128xf32>
    tpu.vector_store %arg4[%c1, %c0_18, %c0_19], %39 {strides = array<i32>} : memref<2x16x128xf32, #tpu.memory_space<vmem>>, vector<1x16x128xf32>,
    return
  }
  func.func @transform_0(%arg0: i32) -> (i32, i32) {
    %c0_i32 = arith.constant 0 : i32
    %c0_i32_0 = arith.constant 0 : i32
    %c0_i32_1 = arith.constant 0 : i32
    return %c0_i32, %c0_i32_0 : i32, i32
  }
  func.func @transform_1(%arg0: i32) -> (i32, i32, i32) {
    %c0_i32 = arith.constant 0 : i32
    %c0_i32_0 = arith.constant 0 : i32
    %c0_i32_1 = arith.constant 0 : i32
    return %arg0, %c0_i32, %c0_i32_0 : i32, i32, i32
  }
  func.func @transform_2(%arg0: i32) -> (i32, i32, i32) {
    %c0_i32 = arith.constant 0 : i32
    %c0_i32_0 = arith.constant 0 : i32
    %c0_i32_1 = arith.constant 0 : i32
    return %arg0, %c0_i32, %c0_i32_0 : i32, i32, i32
  }
  func.func @transform_3(%arg0: i32) -> (i32, i32, i32) {
    %c0_i32 = arith.constant 0 : i32
    %c0_i32_0 = arith.constant 0 : i32
    %c0_i32_1 = arith.constant 0 : i32
    return %arg0, %c0_i32, %c0_i32_0 : i32, i32, i32
  }
}

</mosaic_0001>

<bundles_post_ra>
// kernel: tpu_custom_call.1
= control target key start
LH: loop header
LB: loop body
LE: loop exit
PB: predicated region body
PF: predicated region fallthrough
CT: control target
= control target key end

     0   :  { %8 = vsyncpa [#allocation3], 0  ;;  %s1154_s0 = inlined_call_operand.hbm [shape: bf16[16,128], index: 0, kind: input, shape index: {}]   ;;  %s1155_s1 = inlined_call_operand.hbm [shape: bf16[1,128,512], index: 1, kind: input, shape index: {}]   ;;  %s1156_s2 = inlined_call_operand.hbm [shape: bf16[1,512,128], index: 2, kind: input, shape index: {}]   ;;  %s1157_s3 = inlined_call_operand.hbm [shape: f32[2,16,128], index: 3, kind: output, shape index: {}]  }
   0x1   :  { %9 = vsyncpa [#allocation6], 0 }
   0x2   :  { %10 = vsyncpa [#allocation4], 0  ;;  %s1079_s12 = smov [#allocation5]  }
   0x3   :  { %s28_s13 = sshll.u32 %s1079_s12, 4  ;;  %s29_s13 = int_to_ptr.vmem [resolvable:$true] %s28_s13 }
   0x4   :  { %s1001_s14 = scalar_lea.vmem %s29_s13, 4096  ;;  %p1006_p1 = scmp.lt.s32.totalorder %s29_s13, %s29_s13 }
   0x5   :  { %p1002_p0 = scmp.ne.s32.totalorder %s29_s13, %s1001_s14  ;;  %p1007_p2 = scmp.lt.s32.totalorder %s1001_s14, %s1001_s14 }
   0x7   :  { %p1008_p3 = por %p1007_p2, %p1006_p1 }
   0x9   :  { %p1009_p4 = pnand %p1008_p3, %p1002_p0 }
   0xb   :  { %1012 = shalt.err (!%p1009_p4)
}
   0xc   :  { %s1080_s15 = smov 256   ;;  %s1081_s16 = smov 16  }
   0xd   :  { %34 = dma.hbm_to_vmem [thread:$0]  %s1155_s1, 4096, %s29_s13, [#allocation6], %s1080_s15, %s1080_s15, %s1081_s16  }
   0xe   :  { %s1082_s19 = smov [#allocation2]  }
   0xf   :  { %s16_s20 = sshll.u32 %s1082_s19, 4  ;;  %s17_s20 = int_to_ptr.vmem [resolvable:$true] %s16_s20 }
  0x10   :  { %s1021_s21 = scalar_lea.vmem %s17_s20, 128  ;;  %p1026_p6 = scmp.lt.s32.totalorder %s17_s20, %s17_s20 }
  0x11   :  { %p1022_p5 = scmp.ne.s32.totalorder %s17_s20, %s1021_s21  ;;  %p1027_p7 = scmp.lt.s32.totalorder %s1021_s21, %s1021_s21 }
  0x13   :  { %p1028_p8 = por %p1027_p7, %p1026_p6 }
  0x15   :  { %p1029_p9 = pnand %p1028_p8, %p1022_p5 }
  0x17   :  { %1032 = shalt.err (!%p1029_p9)
}
  0x18   :  { %s1083_s22 = smov 64   ;;  %s1084_s23 = smov 4  }
  0x19   :  { %22 = dma.hbm_to_vmem [thread:$0]  %s1154_s0, 128, %s17_s20, [#allocation3], %s1083_s22, %s1083_s22, %s1084_s23  }
  0x1a   :  { %s1085_s26 = smov [#allocation7]  }
  0x1b   :  { %s40_s27 = sshll.u32 %s1085_s26, 4  ;;  %s41_s27 = int_to_ptr.vmem [resolvable:$true] %s40_s27 }
  0x1c   :  { %s1041_s1 = scalar_lea.vmem %s41_s27, 4096  ;;  %p1046_p11 = scmp.lt.s32.totalorder %s41_s27, %s41_s27 }
  0x1d   :  { %p1042_p10 = scmp.ne.s32.totalorder %s41_s27, %s1041_s1  ;;  %p1047_p12 = scmp.lt.s32.totalorder %s1041_s1, %s1041_s1 }
  0x1f   :  { %p1048_p13 = por %p1047_p12, %p1046_p11 }
  0x21   :  { %p1049_p0 = pnand %p1048_p13, %p1042_p10 }
  0x23   :  { %1052 = shalt.err (!%p1049_p0)
}
  0x24   :  { %46 = dma.hbm_to_vmem [thread:$0]  %s1156_s2, 4096, %s41_s27, [#allocation6], %s1083_s22, %s1083_s22, %s1084_s23  }
  0x25   :  { %1073 = dma.done.wait [#allocation3], 128  }
  0x26   :  { %1074 = vsyncadd [#allocation3], 4294967168 }
  0x27   :  { %1075 = dma.done.wait [#allocation6], 8192  }
  0x28   :  { %1076 = vsyncadd [#allocation6], 4294959104  ;;  %v1086_v0 = vmov 0   ;;  %v888_v1 = vld [vmem:[#allocation5 + $0xe4] ss:$16 sps:$4 sm:$0xff]   ;;  %v936_v33 = vld [vmem:[#allocation2] sm:$0xff]  }
  0x29   :  { %289 = vmatprep.mubr.bf16.mxu0 %v1086_v0  ;;  %332 = vmatprep.mubr.bf16.mxu1 %v1086_v0  ;;  %v890_v2 = vld [vmem:[#allocation5 + $0xec] ss:$16 sps:$4 sm:$0xff]   ;;  %v892_v3 = vld [vmem:[#allocation5 + $0xe0] ss:$16 sps:$4 sm:$0xff]   ;;  %v893_v4 = vld [vmem:[#allocation5 + $0xe8] ss:$16 sps:$4 sm:$0xff]  }
  0x2a   :  { %257 = vmatprep.subr.bf16.mxu0 %v888_v1  ;;  %300 = vmatprep.subr.bf16.mxu1 %v890_v2  ;;  %v894_v5 = vld [vmem:[#allocation5 + $0xc4] ss:$16 sps:$4 sm:$0xff]   ;;  %v896_v6 = vld [vmem:[#allocation5 + $0xcc] ss:$16 sps:$4 sm:$0xff]   ;;  %v898_v7 = vld [vmem:[#allocation5 + $0xc0] ss:$16 sps:$4 sm:$0xff]  }
  0x2b   :  { %258 = vmatpush1.bf16.msra.mxu0 %v892_v3  ;;  %301 = vmatpush1.bf16.msra.mxu1 %v893_v4  ;;  %v899_v8 = vld [vmem:[#allocation5 + $0xc8] ss:$16 sps:$4 sm:$0xff]   ;;  %v900_v9 = vld [vmem:[#allocation5 + $0xa4] ss:$16 sps:$4 sm:$0xff]   ;;  %v902_v10 = vld [vmem:[#allocation5 + $0xac] ss:$16 sps:$4 sm:$0xff]  }
  0x2c   :  { %259 = vmatprep.subr.bf16.mxu0 %v894_v5  ;;  %302 = vmatprep.subr.bf16.mxu1 %v896_v6  ;;  %v904_v11 = vld [vmem:[#allocation5 + $0xa0] ss:$16 sps:$4 sm:$0xff]   ;;  %v905_v12 = vld [vmem:[#allocation5 + $0xa8] ss:$16 sps:$4 sm:$0xff]   ;;  %v906_v13 = vld [vmem:[#allocation5 + $0x84] ss:$16 sps:$4 sm:$0xff]  }
  0x2d   :  { %v908_v14 = vld [vmem:[#allocation5 + $0x8c] ss:$16 sps:$4 sm:$0xff]   ;;  %v910_v15 = vld [vmem:[#allocation5 + $0x80] ss:$16 sps:$4 sm:$0xff]   ;;  %v911_v16 = vld [vmem:[#allocation5 + $0x88] ss:$16 sps:$4 sm:$0xff]  }
  0x2e   :  { %v912_v17 = vld [vmem:[#allocation5 + $0x64] ss:$16 sps:$4 sm:$0xff]   ;;  %v914_v18 = vld [vmem:[#allocation5 + $0x6c] ss:$16 sps:$4 sm:$0xff]   ;;  %v916_v19 = vld [vmem:[#allocation5 + $0x60] ss:$16 sps:$4 sm:$0xff]  }
  0x2f   :  { %260 = vmatpush1.bf16.msra.mxu0 %v898_v7  ;;  %303 = vmatpush1.bf16.msra.mxu1 %v899_v8  ;;  %v917_v20 = vld [vmem:[#allocation5 + $0x68] ss:$16 sps:$4 sm:$0xff]   ;;  %v918_v21 = vld [vmem:[#allocation5 + $0x44] ss:$16 sps:$4 sm:$0xff]   ;;  %v920_v22 = vld [vmem:[#allocation5 + $0x4c] ss:$16 sps:$4 sm:$0xff]  }
  0x30   :  { %261 = vmatprep.subr.bf16.mxu0 %v900_v9  ;;  %304 = vmatprep.subr.bf16.mxu1 %v902_v10  ;;  %v922_v23 = vld [vmem:[#allocation5 + $0x40] ss:$16 sps:$4 sm:$0xff]   ;;  %v923_v24 = vld [vmem:[#allocation5 + $0x48] ss:$16 sps:$4 sm:$0xff]   ;;  %v924_v25 = vld [vmem:[#allocation5 + $0x24] ss:$16 sps:$4 sm:$0xff]  }
  0x31   :  { %v926_v26 = vld [vmem:[#allocation5 + $0x2c] ss:$16 sps:$4 sm:$0xff]   ;;  %v928_v27 = vld [vmem:[#allocation5 + $0x20] ss:$16 sps:$4 sm:$0xff]   ;;  %v929_v28 = vld [vmem:[#allocation5 + $0x28] ss:$16 sps:$4 sm:$0xff]  }
  0x32   :  { %v930_v29 = vld [vmem:[#allocation5 + $0x4] ss:$16 sps:$4 sm:$0xff]   ;;  %v932_v30 = vld [vmem:[#allocation5 + $0xc] ss:$16 sps:$4 sm:$0xff]   ;;  %v934_v31 = vld [vmem:[#allocation5] ss:$16 sps:$4 sm:$0xff]  }
  0x33   :  { %262 = vmatpush1.bf16.msra.mxu0 %v904_v11  ;;  %305 = vmatpush1.bf16.msra.mxu1 %v905_v12  ;;  %v935_v32 = vld [vmem:[#allocation5 + $0x8] ss:$16 sps:$4 sm:$0xff]   ;;  %v939_v48 = vld [vmem:[#allocation7 + $0x70] sm:$0xff]   ;;  %s1087_s0 = smov [#allocation8]  }
  0x34   :  { %263 = vmatprep.subr.bf16.mxu0 %v906_v13  ;;  %306 = vmatprep.subr.bf16.mxu1 %v908_v14  ;;  %v937_v46 = vld [vmem:[#allocation7 + $0x78] sm:$0xff]   ;;  %v944_v51 = vld [vmem:[#allocation7 + $0xf0] sm:$0xff]   ;;  %v943_v53 = vld [vmem:[#allocation7 + $0x68] sm:$0xff]   ;;  %s755_s2 = sshll.u32 %s1087_s0, 4  ;;  %s756_s2 = int_to_ptr.vmem [resolvable:$true] %s755_s2 }
  0x35   :  { %v938_v47 = vld [vmem:[#allocation7 + $0x38] sm:$0xff]   ;;  %v941_v52 = vld [vmem:[#allocation7 + $0x30] sm:$0xff]   ;;  %s1053_s30 = scalar_lea.vmem %s756_s2, 512  ;;  %p1058_p2 = scmp.lt.s32.totalorder %s756_s2, %s756_s2 }
  0x36   :  { %v940_v49 = vld [vmem:[#allocation7 + $0xf8] sm:$0xff]   ;;  %p1054_p1 = scmp.ne.s32.totalorder %s756_s2, %s1053_s30  ;;  %p1059_p3 = scmp.lt.s32.totalorder %s1053_s30, %s1053_s30 }
  0x37   :  { %264 = vmatpush1.bf16.msra.mxu0 %v910_v15  ;;  %307 = vmatpush1.bf16.msra.mxu1 %v911_v16  ;;  %v942_v50 = vld [vmem:[#allocation7 + $0xb8] sm:$0xff]  }
  0x38   :  { %265 = vmatprep.subr.bf16.mxu0 %v912_v17  ;;  %308 = vmatprep.subr.bf16.mxu1 %v914_v18  ;;  %p1060_p4 = por %p1059_p3, %p1058_p2 }
  0x3a   :  { %p1061_p5 = pnand %p1060_p4, %p1054_p1 }
  0x3b   :  { %266 = vmatpush1.bf16.msra.mxu0 %v916_v19  ;;  %309 = vmatpush1.bf16.msra.mxu1 %v917_v20 }
  0x3c   :  { %267 = vmatprep.subr.bf16.mxu0 %v918_v21  ;;  %310 = vmatprep.subr.bf16.mxu1 %v920_v22  ;;  %v945_v22 = vld [vmem:[#allocation7 + $0x28] sm:$0xff]  }
  0x3f   :  { %268 = vmatpush1.bf16.msra.mxu0 %v922_v23  ;;  %311 = vmatpush1.bf16.msra.mxu1 %v923_v24  ;;  %v946_v23 = vld [vmem:[#allocation7 + $0xb0] sm:$0xff]   ;;  %v947_v24 = vld [vmem:[#allocation7 + $0x60] sm:$0xff]  }
  0x40   :  { %269 = vmatprep.subr.bf16.mxu0 %v924_v25  ;;  %312 = vmatprep.subr.bf16.mxu1 %v926_v26  ;;  %v948_v25 = vld [vmem:[#allocation7 + $0xe8] sm:$0xff]   ;;  %v949_v26 = vld [vmem:[#allocation7 + $0x20] sm:$0xff]  }
  0x43   :  { %270 = vmatpush1.bf16.msra.mxu0 %v928_v27  ;;  %313 = vmatpush1.bf16.msra.mxu1 %v929_v28  ;;  %v950_v27 = vld [vmem:[#allocation7 + $0xa8] sm:$0xff]   ;;  %v951_v28 = vld [vmem:[#allocation7 + $0x58] sm:$0xff]  }
  0x44   :  { %271 = vmatprep.subr.bf16.mxu0 %v930_v29  ;;  %314 = vmatprep.subr.bf16.mxu1 %v932_v30  ;;  %v952_v29 = vld [vmem:[#allocation7 + $0xe0] sm:$0xff]   ;;  %v953_v30 = vld [vmem:[#allocation7 + $0x18] sm:$0xff]  }
  0x47   :  { %272 = vmatpush1.bf16.msra.mxu0 %v934_v31  ;;  %315 = vmatpush1.bf16.msra.mxu1 %v935_v32  ;;  %v954_v31 = vld [vmem:[#allocation7 + $0xa0] sm:$0xff]   ;;  %v955_v32 = vld [vmem:[#allocation7 + $0x50] sm:$0xff]  }
  0x48   :  { %833 = vmatprep.subr.bf16.mxu0 %v937_v46  ;;  %855 = vmatprep.subr.bf16.mxu1 %v940_v49 }
  0x4a   :  { %290 = vmatmul.mubr.bf16.vlgmr.msra.gmra.mxu0 %v936_v33  ;;  %333 = vmatmul.mubr.bf16.vlgmr.msra.gmra.mxu1 %v936_v33  ;;  %v956_v33 = vld [vmem:[#allocation7 + $0xd8] sm:$0xff]  }
  0x4b   :  { %834 = vmatpush3.bf16.msra.mxu0 %v938_v47  ;;  %856 = vmatpush3.bf16.msra.mxu1 %v942_v50 }
  0x4c   :  { %835 = vmatprep.subr.bf16.mxu0 %v939_v48  ;;  %857 = vmatprep.subr.bf16.mxu1 %v944_v51 }
  0x4f   :  { %836 = vmatpush3.bf16.msra.mxu0 %v941_v52  ;;  %858 = vmatpush3.bf16.msra.mxu1 %v946_v23 }
  0x50   :  { %837 = vmatprep.subr.bf16.mxu0 %v943_v53  ;;  %859 = vmatprep.subr.bf16.mxu1 %v948_v25 }
  0x53   :  { %838 = vmatpush3.bf16.msra.mxu0 %v945_v22  ;;  %860 = vmatpush3.bf16.msra.mxu1 %v950_v27 }
  0x54   :  { %839 = vmatprep.subr.bf16.mxu0 %v947_v24  ;;  %861 = vmatprep.subr.bf16.mxu1 %v952_v29 }
  0x57   :  { %840 = vmatpush3.bf16.msra.mxu0 %v949_v26  ;;  %862 = vmatpush3.bf16.msra.mxu1 %v954_v31 }
  0x58   :  { %841 = vmatprep.subr.bf16.mxu0 %v951_v28  ;;  %863 = vmatprep.subr.bf16.mxu1 %v956_v33 }
  0x5b   :  { %842 = vmatpush3.bf16.msra.mxu0 %v953_v30 }
  0x5c   :  { %843 = vmatprep.subr.bf16.mxu0 %v955_v32 }
 0x10a   :  { %v291_v34 = vpop.f32.mrf.mxu0  ;;  %v334_v35 = vpop.f32.mrf.mxu1 }
 0x10c   :  { %v293_v36 = vpop.f32.mrf.mxu0  ;;  %v336_v37 = vpop.f32.mrf.mxu1 }
 0x10d   :  { %v546_v38 = vmax.f32 %v334_v35, %v336_v37  ;;  %v343_v39 = vmax.f32 %v291_v34, %v293_v36 }
 0x10e   :  { %v295_v40 = vpop.f32.mrf.mxu0  ;;  %v338_v41 = vpop.f32.mrf.mxu1 }
 0x10f   :  { %547 = vmax.xlane.f32.xlu1 %v546_v38  ;;  %344 = vmax.xlane.f32.xlu0 %v343_v39  ;;  %v961_v38 = vld [vmem:[#allocation7 + $0x8] sm:$0xff]   ;;  %v962_v39 = vld [vmem:[#allocation7 + $0x90] sm:$0xff]  }
 0x110   :  { %v297_v42 = vpop.f32.mrf.mxu0  ;;  %v340_v43 = vpop.f32.mrf.mxu1 }
 0x111   :  { %v549_v44 = vmax.f32 %v338_v41, %v340_v43  ;;  %v346_v45 = vmax.f32 %v295_v40, %v297_v42 }
 0x113   :  { %550 = vmax.xlane.f32.xlu1 %v549_v44  ;;  %347 = vmax.xlane.f32.xlu0 %v346_v45  ;;  %v967_v44 = vld [vmem:[#allocation7 + $0xc0] sm:$0xff]  }
 0x114   :  { %v968_v45 = vld [vmem:[#allocation7 + $0x80] sm:$0xff]  }
 0x198   :  { %v548_v54 = vpop.xlane.xlu1 %547  ;;  %v345_v55 = vpop.xlane.xlu0 %344 }
 0x199   :  { %v552_v56 = vsub.f32 %v334_v35, %v548_v54  ;;  %v349_v57 = vsub.f32 %v291_v34, %v345_v55  ;;  %v350_v58 = vsub.f32 %v293_v36, %v345_v55  ;;  %v553_v59 = vsub.f32 %v336_v37, %v548_v54  ;;  %v957_v34 = vld [vmem:[#allocation7 + $0x10] sm:$0xff]   ;;  %v958_v35 = vld [vmem:[#allocation7 + $0x98] sm:$0xff]   ;;  %v959_v36 = vld [vmem:[#allocation7 + $0x48] sm:$0xff]  }
 0x19a   :  { %v960_v37 = vld [vmem:[#allocation7 + $0xd0] sm:$0xff]   ;;  %844 = vmatpush3.bf16.msra.mxu0 %v957_v34  ;;  %864 = vmatpush3.bf16.msra.mxu1 %v958_v35 }
 0x19b   :  { %v353_v60 = vmul.f32 1.442695, %v349_v57  ;;  %v355_v61 = vmul.f32 1.442695, %v350_v58  ;;  %v556_v0 = vmul.f32 1.442695, %v552_v56  ;;  %845 = vmatprep.subr.bf16.mxu0 %v959_v36  ;;  %865 = vmatprep.subr.bf16.mxu1 %v960_v37 }
 0x19c   :  { %v551_v62 = vpop.xlane.xlu1 %550  ;;  %v348_v63 = vpop.xlane.xlu0 %347  ;;  %v558_v3 = vmul.f32 1.442695, %v553_v59 }
 0x19d   :  { %v554_v1 = vsub.f32 %v338_v41, %v551_v62  ;;  %v351_v2 = vsub.f32 %v295_v40, %v348_v63  ;;  %v555_v4 = vsub.f32 %v340_v43, %v551_v62  ;;  %v352_v5 = vsub.f32 %v297_v42, %v348_v63  ;;  %v963_v40 = vld [vmem:[#allocation7 + $0x40] sm:$0xff]   ;;  %v964_v41 = vld [vmem:[#allocation7 + $0xc8] sm:$0xff]  }
 0x19e   :  { %969 = vpow2.f32 %v353_v60  ;;  %846 = vmatpush3.bf16.msra.mxu0 %v961_v38  ;;  %866 = vmatpush3.bf16.msra.mxu1 %v962_v39  ;;  %v965_v42 = vld [vmem:[#allocation7] sm:$0xff]   ;;  %v966_v43 = vld [vmem:[#allocation7 + $0x88] sm:$0xff]  }
 0x19f   :  { %v357_v6 = vmul.f32 1.442695, %v351_v2  ;;  %971 = vpow2.f32 %v355_v61  ;;  %v359_v7 = vmul.f32 1.442695, %v352_v5  ;;  %v560_v8 = vmul.f32 1.442695, %v554_v1  ;;  %847 = vmatprep.subr.bf16.mxu0 %v963_v40  ;;  %867 = vmatprep.subr.bf16.mxu1 %v964_v41 }
 0x1a0   :  { %973 = vpow2.f32 %v556_v0  ;;  %v562_v9 = vmul.f32 1.442695, %v555_v4 }
 0x1a1   :  { %975 = vpow2.f32 %v558_v3 }
 0x1a2   :  { %977 = vpow2.f32 %v357_v6  ;;  %848 = vmatpush3.bf16.msra.mxu0 %v965_v42  ;;  %868 = vmatpush3.bf16.msra.mxu1 %v966_v43 }
 0x1a3   :  { %979 = vpow2.f32 %v359_v7  ;;  %869 = vmatprep.subr.bf16.mxu1 %v967_v44 }
 0x1a4   :  { %981 = vpow2.f32 %v560_v8 }
 0x1a5   :  { %983 = vpow2.f32 %v562_v9 }
 0x1a6   :  { %870 = vmatpush3.bf16.msra.mxu1 %v968_v45 }
 0x1ab   :  { %v1119_v10 = vpop.eup %969 }
 0x1ac   :  { %v1121_v11 = vpop.eup %971 }
 0x1ad   :  { %v1123_v12 = vpop.eup %973  ;;  %v361_v13 = vadd.f32 %v1121_v11, %v1119_v10 }
 0x1ae   :  { %v1127_v14 = vpop.eup %975 }
 0x1af   :  { %v1129_v15 = vpop.eup %977  ;;  %362 = vadd.xlane.f32.xlu0 %v361_v13  ;;  %v564_v18 = vadd.f32 %v1127_v14, %v1123_v12 }
 0x1b0   :  { %v1131_v16 = vpop.eup %979 }
 0x1b1   :  { %v1133_v17 = vpop.eup %981  ;;  %v364_v19 = vadd.f32 %v1131_v16, %v1129_v15 }
 0x1b2   :  { %v1139_v20 = vpop.eup %983 }
 0x1b3   :  { %565 = vadd.xlane.f32.xlu0 %v564_v18  ;;  %365 = vadd.xlane.f32.xlu1 %v364_v19  ;;  %v567_v21 = vadd.f32 %v1139_v20, %v1133_v17 }
 0x1b7   :  { %568 = vadd.xlane.f32.xlu1 %v567_v21 }
 0x238   :  { %v363_v46 = vpop.xlane.xlu0 %362 }
 0x239   :  { %985 = vrcp.f32 %v363_v46 }
 0x23c   :  { %v366_v47 = vpop.xlane.xlu1 %365  ;;  %v566_v48 = vpop.xlane.xlu0 %565 }
 0x23d   :  { %987 = vrcp.f32 %v366_v47 }
 0x23e   :  { %989 = vrcp.f32 %v566_v48 }
 0x240   :  { %v569_v49 = vpop.xlane.xlu1 %568 }
 0x241   :  { %991 = vrcp.f32 %v569_v49 }
 0x246   :  { %v986_v50 = vpop.eup %985 }
 0x247   :  { %v370_v52 = vmul.f32 %v986_v50, %v1121_v11  ;;  %v369_v54 = vmul.f32 %v986_v50, %v1119_v10 }
 0x24a   :  { %v988_v51 = vpop.eup %987 }
 0x24b   :  { %v372_v53 = vmul.f32 %v988_v51, %v1131_v16  ;;  %v371_v55 = vmul.f32 %v988_v51, %v1129_v15  ;;  %v990_v56 = vpop.eup %989 }
 0x24c   :  { %v573_v60 = vmul.f32 %v990_v56, %v1127_v14  ;;  %v572_v62 = vmul.f32 %v990_v56, %v1123_v12 }
 0x24d   :  { %v374_v57 = vpack.c.bf16 %v372_v53, %v370_v52  ;;  %v373_v58 = vpack.c.bf16 %v371_v55, %v369_v54 }
 0x24e   :  { %v992_v59 = vpop.eup %991 }
 0x24f   :  { %535 = vmatprep.mubr.bf16.mxu0 %v374_v57  ;;  %v575_v61 = vmul.f32 %v992_v59, %v1139_v20  ;;  %v574_v63 = vmul.f32 %v992_v59, %v1133_v17 }
 0x250   :  { %536 = vmatmul.mubr.bf16.vlgmr.msra.gmra.mxu0 %v373_v58 }
 0x251   :  { %v577_v0 = vpack.c.bf16 %v575_v61, %v573_v60  ;;  %v576_v1 = vpack.c.bf16 %v574_v63, %v572_v62 }
 0x253   :  { %738 = vmatprep.mubr.bf16.mxu1 %v577_v0 }
 0x254   :  { %739 = vmatmul.mubr.bf16.vlgmr.msra.gmra.mxu1 %v576_v1 }
 0x310   :  { %v849_v2 = vpop.f32.mrf.mxu0 }
 0x312   :  { %v850_v3 = vpop.f32.mrf.mxu0 }
 0x313   :  { %v851_v4 = vadd.f32 %v850_v3, %v849_v2 }
 0x314   :  { %v852_v5 = vpop.f32.mrf.mxu0  ;;  %v871_v6 = vpop.f32.mrf.mxu1 }
 0x315   :  { %544 = vst [vmem:[#allocation8] sm:$0xff] %v851_v4 }
 0x316   :  { %v853_v7 = vpop.f32.mrf.mxu0  ;;  %v872_v8 = vpop.f32.mrf.mxu1 }
 0x317   :  { %v854_v9 = vadd.f32 %v853_v7, %v852_v5  ;;  %v873_v10 = vadd.f32 %v872_v8, %v871_v6 }
 0x318   :  { %v874_v11 = vpop.f32.mrf.mxu1 }
 0x319   :  { %545 = vst [vmem:[#allocation8 + $0x8] sm:$0xff] %v854_v9  ;;  %748 = vst [vmem:[#allocation8 + $0x10] sm:$0xff] %v873_v10 }
 0x31a   :  { %v875_v12 = vpop.f32.mrf.mxu1 }
 0x31b   :  { %v876_v13 = vadd.f32 %v875_v12, %v874_v11 }
 0x31d   :  { %749 = vst [vmem:[#allocation8 + $0x18] sm:$0xff] %v876_v13 }
 0x31e   :  { %1064 = shalt.err (!%p1061_p5)
}
 0x31f   :  { %s1088_s4 = smov 128   ;;  %s1089_s5 = smov 8  }
 0x320   :  { %761 = dma.vmem_to_hbm [thread:$0]  %s756_s2, 512, %s1157_s3, [#allocation4], %s1088_s4, %s1088_s4, %s1089_s5  }
 0x321   :  { %1077 = dma.done.wait [#allocation4], 512  }
 0x322   :  { %1078 = vsyncadd [#allocation4], 4294966784 }
 0x323   :  { %765 = vsyncpa [#allocation3], 1 }
 0x324   :  { %766 = vsyncpa [#allocation6], 1 }
 0x325   :  { %767 = vsyncpa [#allocation4], 1 }

</bundles_post_ra>
